<compile_context>
chip_gen: v6e
topology: v6e:2x2x1
jax: 0.10.0
libtpu: 0.0.40
codegen_flags: <defaults>
</compile_context>

<pallas_src>
import functools

import jax
import jax.numpy as jnp
from jax.experimental import pallas as pl
from jax.experimental.pallas import tpu as pltpu

BN_EPS = 1e-5


def _round_up(x, m):
    return ((x + m - 1) // m) * m


def _pick_tile_hw(hw, cin, cout, budget_bytes=12 << 20):
    """Largest lane-dense tile (multiple of 128, <=16384) within a VMEM budget.

    Budget covers the double-buffered x + f + g blocks (f32)."""
    hw_pad = _round_up(hw, 128)
    per_lane_bytes = 2 * 4 * (cin + cout)          # 2 buffers * 4B * channels
    t = budget_bytes // per_lane_bytes
    t = max(128, (t // 128) * 128)
    t = min(t, 16384, hw_pad)
    return int(t)


def _fused_kernel(x_ref, w_ref, gamma_ref, beta_ref, f_ref, g_ref,
                  sumx_sc, xcov_sc, scale_sc, shift_sc,
                  *, c_split, hw, tile_hw, inv_n, needs_mask):
    """Fused stats(phase 0) + normalize/tanh(phase 1) kernel.

    x_ref:            (1, Cin, tile_hw)  input tile (channel-major, lanes=space)
    w_ref:            (Cout, Cin)        fused conv weight (F rows then G rows)
    gamma_ref/beta_ref: (Cout, 1)        BN affine params
    f_ref:            (1, Cf, tile_hw)   F output tile
    g_ref:            (1, Cg, tile_hw)   G output tile  (Cf + Cg = Cout)
    sumx_sc: (Cin, 1), xcov_sc: (Cin, Cin)  input-moment accumulators
    scale_sc/shift_sc: (Cout, 1)         folded BN params (persist phase 0->1)
    """
    p = pl.program_id(0)
    b = pl.program_id(1)
    t = pl.program_id(2)
    last_b = pl.num_programs(1) - 1
    last_t = pl.num_programs(2) - 1

    @pl.when(p == 0)
    def _stats_phase():
        @pl.when(jnp.logical_and(b == 0, t == 0))
        def _init():
            sumx_sc[...] = jnp.zeros_like(sumx_sc)
            xcov_sc[...] = jnp.zeros_like(xcov_sc)

        x = x_ref[0]                                   # (Cin, tile_hw)
        if needs_mask:
            rem = hw - t * tile_hw
            lane = jax.lax.broadcasted_iota(jnp.int32, x.shape, 1)
            x = jnp.where(lane < rem, x, 0.0)

        sumx_sc[...] += jnp.sum(x, axis=1, keepdims=True)
        # S += X @ X^T, contracting the (large) spatial dim of both operands.
        xcov_sc[...] += jax.lax.dot_general(
            x, x, dimension_numbers=(((1,), (1,)), ((), ())),
            preferred_element_type=jnp.float32)

        @pl.when(jnp.logical_and(b == last_b, t == last_t))
        def _finalize():
            w = w_ref[...]                             # (Cout, Cin)
            mean_x = sumx_sc[...] * inv_n              # (Cin, 1)
            mean_y = jnp.dot(w, mean_x,
                             preferred_element_type=jnp.float32)   # (Cout, 1)
            ws = jnp.dot(w, xcov_sc[...],
                         preferred_element_type=jnp.float32)       # (Cout, Cin)
            ey2 = jnp.sum(ws * w, axis=1, keepdims=True) * inv_n   # (Cout, 1)
            var = jnp.maximum(ey2 - mean_y * mean_y, 0.0)
            scale = gamma_ref[...] * jax.lax.rsqrt(var + BN_EPS)
            scale_sc[...] = scale
            shift_sc[...] = beta_ref[...] - mean_y * scale

    @pl.when(p == 1)
    def _apply_phase():
        # 1x1 conv: (Cout, Cin) @ (Cin, tile_hw) -> (Cout, tile_hw).
        y = jnp.dot(w_ref[...], x_ref[0], preferred_element_type=jnp.float32)
        out = jnp.tanh(y * scale_sc[...] + shift_sc[...])
        f_ref[0] = out[:c_split]
        g_ref[0] = out[c_split:]


def cpde_forward(z, w_cat, gamma_cat, beta_cat, z_dim, x_dim):
    """Fused F/G forward on NCHW input z of shape (B, z_dim, H, W)."""
    B, Cin, H, W = z.shape
    HW = H * W
    Cf = z_dim
    Cg = z_dim * x_dim
    Cout = Cf + Cg
    tile_hw = _pick_tile_hw(HW, Cin, Cout)
    n_tiles = pl.cdiv(HW, tile_hw)
    needs_mask = (HW % tile_hw) != 0
    inv_n = 1.0 / float(B * HW)

    x3 = z.reshape(B, Cin, HW)   # free reshape, keeps NCHW memory layout

    full = lambda p, b, t: (0, 0)
    x_spec = pl.BlockSpec((1, Cin, tile_hw), lambda p, b, t: (b, 0, t))
    w_spec = pl.BlockSpec((Cout, Cin), full)
    vec_spec = pl.BlockSpec((Cout, 1), full)
    # During phase 0 the outputs park on block (0,0,0) and are never written
    # back (block index unchanged); phase 1 visits every block exactly once,
    # so every output block's visits are contiguous in grid order.
    f_spec = pl.BlockSpec((1, Cf, tile_hw), lambda p, b, t: (b * p, 0, t * p))
    g_spec = pl.BlockSpec((1, Cg, tile_hw), lambda p, b, t: (b * p, 0, t * p))

    flops = 2 * B * HW * Cin * (Cin + Cout)            # stats + apply matmuls
    bytes_accessed = 4 * B * HW * (2 * Cin + Cout) + 4 * Cout * (Cin + 2)
    transcendentals = B * HW * Cout                     # tanh

    f3, g3 = pl.pallas_call(
        functools.partial(_fused_kernel, c_split=Cf, hw=HW, tile_hw=tile_hw,
                          inv_n=inv_n, needs_mask=needs_mask),
        grid_spec=pltpu.PrefetchScalarGridSpec(
            num_scalar_prefetch=0,
            grid=(2, B, n_tiles),
            in_specs=[x_spec, w_spec, vec_spec, vec_spec],
            out_specs=[f_spec, g_spec],
            scratch_shapes=[pltpu.VMEM((Cin, 1), jnp.float32),
                            pltpu.VMEM((Cin, Cin), jnp.float32),
                            pltpu.VMEM((Cout, 1), jnp.float32),
                            pltpu.VMEM((Cout, 1), jnp.float32)]),
        out_shape=[jax.ShapeDtypeStruct((B, Cf, HW), jnp.float32),
                   jax.ShapeDtypeStruct((B, Cg, HW), jnp.float32)],
        compiler_params=pltpu.CompilerParams(
            dimension_semantics=("arbitrary", "arbitrary", "arbitrary"),
            vmem_limit_bytes=32 * 1024 * 1024),
        cost_estimate=pl.CostEstimate(
            flops=flops, bytes_accessed=bytes_accessed,
            transcendentals=transcendentals),
    )(x3, w_cat, gamma_cat, beta_cat)

    f = f3.reshape(B, Cf, H, W)                    # free reshape
    g = g3.reshape(B, z_dim, x_dim, H, W)          # matches torch .view
    return f, g


class CPDEFunctionPallas:
    """JAX/Pallas port of CPDEFunction (fused F/G 1x1-conv + BN + tanh)."""

    def __init__(self, z_dim, x_dim, key):
        self.z_dim = z_dim
        self.x_dim = x_dim
        kf_w, kf_b, kg_w, kg_b = jax.random.split(key, 4)
        # Deterministic synthetic parameters (same shapes as the nn.Module).
        wF = 0.1 * jax.random.normal(kf_w, (z_dim, z_dim, 1, 1), jnp.float32)
        wG = 0.1 * jax.random.normal(kg_w, (z_dim * x_dim, z_dim, 1, 1),
                                     jnp.float32)
        # Conv biases exist in the module but are cancelled exactly by BN's
        # mean subtraction in training mode, so they are not fed to the kernel.
        self.bF = 0.1 * jax.random.normal(kf_b, (z_dim,), jnp.float32)
        self.bG = 0.1 * jax.random.normal(kg_b, (z_dim * x_dim,), jnp.float32)
        gammaF = jnp.ones((z_dim,), jnp.float32)
        betaF = jnp.zeros((z_dim,), jnp.float32)
        gammaG = jnp.ones((z_dim * x_dim,), jnp.float32)
        betaG = jnp.zeros((z_dim * x_dim,), jnp.float32)

        cout = z_dim + z_dim * x_dim
        # Fused (F ++ G) parameters, channel-major weight (Cout, Cin).
        self.w_cat = jnp.concatenate(
            [wF.reshape(z_dim, z_dim), wG.reshape(z_dim * x_dim, z_dim)],
            axis=0)
        self.gamma_cat = jnp.concatenate([gammaF, gammaG]).reshape(cout, 1)
        self.beta_cat = jnp.concatenate([betaF, betaG]).reshape(cout, 1)

        self._forward = jax.jit(
            lambda z, w, g, b: cpde_forward(z, w, g, b, z_dim, x_dim))

    def __call__(self, z):
        return self._forward(z, self.w_cat, self.gamma_cat, self.beta_cat)


def _reference_forward(z, w_cat, gamma_cat, beta_cat, z_dim, x_dim):
    """Pure-JAX reference (conv1x1 + training-mode BN + tanh)."""
    B, _, H, W = z.shape
    y = jnp.einsum("oc,bchw->bohw", w_cat, z)
    mean = jnp.mean(y, axis=(0, 2, 3), keepdims=True)
    var = jnp.mean((y - mean) ** 2, axis=(0, 2, 3), keepdims=True)
    yh = (y - mean) * jax.lax.rsqrt(var + BN_EPS)
    out = jnp.tanh(yh * gamma_cat.reshape(1, -1, 1, 1)
                   + beta_cat.reshape(1, -1, 1, 1))
    f = out[:, :z_dim]
    g = out[:, z_dim:].reshape(B, z_dim, x_dim, H, W)
    return f, g


if __name__ == "__main__":
    key = jax.random.PRNGKey(0)
    k_param, k_x = jax.random.split(key)

    z_dim, x_dim = 8, 4
    B, H, W = 2, 16, 16

    model = CPDEFunctionPallas(z_dim, x_dim, k_param)
    z = jax.random.normal(k_x, (B, z_dim, H, W), jnp.float32)

    f_out, g_out = model(z)
    jax.block_until_ready((f_out, g_out))

    assert f_out.shape == (B, z_dim, H, W)
    assert g_out.shape == (B, z_dim, x_dim, H, W)

    f_ref, g_ref = _reference_forward(
        z, model.w_cat, model.gamma_cat, model.beta_cat, z_dim, x_dim)
    assert jnp.allclose(f_out, f_ref, rtol=1e-4, atol=1e-4)
    assert jnp.allclose(g_out, g_ref, rtol=1e-4, atol=1e-4)

    print("KERNEL_OK")
</pallas_src>

<mosaic_0001>
module attributes {stable_mosaic.version = 11 : i64} {
  func.func @_fused_kernel(%arg0: i32, %arg1: i32, %arg2: i32, %arg3: memref<1x8x256xf32, #tpu.memory_space<vmem>>, %arg4: memref<40x8xf32, #tpu.memory_space<vmem>>, %arg5: memref<40x1xf32, #tpu.memory_space<vmem>>, %arg6: memref<40x1xf32, #tpu.memory_space<vmem>>, %arg7: memref<1x8x256xf32, #tpu.memory_space<vmem>>, %arg8: memref<1x32x256xf32, #tpu.memory_space<vmem>>, %arg9: memref<8x1xf32, #tpu.memory_space<vmem>>, %arg10: memref<8x8xf32, #tpu.memory_space<vmem>>, %arg11: memref<40x1xf32, #tpu.memory_space<vmem>>, %arg12: memref<40x1xf32, #tpu.memory_space<vmem>>) attributes {dimension_semantics = [#tpu.dimension_semantics<arbitrary>, #tpu.dimension_semantics<arbitrary>, #tpu.dimension_semantics<arbitrary>], iteration_bounds = array<i64: 2, 2, 1>, scalar_prefetch = 0 : i64, scratch_operands = 4 : i64, tpu.core_type = #tpu.core_type<tc>, window_params = [{transform_indices = @transform_0, window_bounds = array<i64: 1, 8, 256>}, {pipeline_mode = #tpu.pipeline_mode<synchronous>, transform_indices = @transform_1, window_bounds = array<i64: 40, 8>}, {pipeline_mode = #tpu.pipeline_mode<synchronous>, transform_indices = @transform_2, window_bounds = array<i64: 40, 1>}, {pipeline_mode = #tpu.pipeline_mode<synchronous>, transform_indices = @transform_3, window_bounds = array<i64: 40, 1>}, {transform_indices = @transform_4, window_bounds = array<i64: 1, 8, 256>}, {transform_indices = @transform_5, window_bounds = array<i64: 1, 32, 256>}]} {
    %c0_i32 = arith.constant 0 : i32
    %0 = arith.cmpi eq, %arg0, %c0_i32 : i32
    %1 = arith.extui %0 : i1 to i32
    %c0_i32_0 = arith.constant 0 : i32
    %2 = arith.cmpi ne, %1, %c0_i32_0 : i32
    scf.if %2 {
      %c0_i32_2 = arith.constant 0 : i32
      %6 = arith.cmpi eq, %arg1, %c0_i32_2 : i32
      %c0_i32_3 = arith.constant 0 : i32
      %7 = arith.cmpi eq, %arg2, %c0_i32_3 : i32
      %8 = arith.andi %6, %7 : i1
      %9 = arith.extui %8 : i1 to i32
      %c0_i32_4 = arith.constant 0 : i32
      %10 = arith.cmpi ne, %9, %c0_i32_4 : i32
      scf.if %10 {
        %cst_19 = arith.constant 0.000000e+00 : f32
        %27 = vector.broadcast %cst_19 : f32 to vector<8x1xf32>
        %c0_20 = arith.constant 0 : index
        %c0_21 = arith.constant 0 : index
        %28 = vector.load %arg9[%c0_20, %c0_21] : memref<8x1xf32, #tpu.memory_space<vmem>>, vector<8x1xf32>
        tpu.vector_store %arg9[%c0_20, %c0_21], %27 {strides = array<i32>} : memref<8x1xf32, #tpu.memory_space<vmem>>, vector<8x1xf32>,
        %cst_22 = arith.constant 0.000000e+00 : f32
        %29 = vector.broadcast %cst_22 : f32 to vector<8x8xf32>
        %c0_23 = arith.constant 0 : index
        %c0_24 = arith.constant 0 : index
        %30 = vector.load %arg10[%c0_23, %c0_24] : memref<8x8xf32, #tpu.memory_space<vmem>>, vector<8x8xf32>
        tpu.vector_store %arg10[%c0_23, %c0_24], %29 {strides = array<i32>} : memref<8x8xf32, #tpu.memory_space<vmem>>, vector<8x8xf32>,
      } else {
      }
      %c0 = arith.constant 0 : index
      %c0_5 = arith.constant 0 : index
      %c0_6 = arith.constant 0 : index
      %11 = vector.load %arg3[%c0, %c0_5, %c0_6] : memref<1x8x256xf32, #tpu.memory_space<vmem>>, vector<1x8x256xf32>
      %12 = vector.shape_cast %11 : vector<1x8x256xf32> to vector<8x256xf32>
      %c0_7 = arith.constant 0 : index
      %c0_8 = arith.constant 0 : index
      %13 = vector.load %arg9[%c0_7, %c0_8] : memref<8x1xf32, #tpu.memory_space<vmem>>, vector<8x1xf32>
      %cst = arith.constant dense<0.000000e+00> : vector<8xf32>
      %14 = vector.multi_reduction <add>, %12, %cst [1] : vector<8x256xf32> to vector<8xf32>
      %15 = vector.shape_cast %14 : vector<8xf32> to vector<8x1xf32>
      %16 = arith.addf %13, %15 : vector<8x1xf32>
      %c0_9 = arith.constant 0 : index
      %c0_10 = arith.constant 0 : index
      %17 = vector.load %arg9[%c0_9, %c0_10] : memref<8x1xf32, #tpu.memory_space<vmem>>, vector<8x1xf32>
      tpu.vector_store %arg9[%c0_9, %c0_10], %16 {strides = array<i32>} : memref<8x1xf32, #tpu.memory_space<vmem>>, vector<8x1xf32>,
      %c0_11 = arith.constant 0 : index
      %c0_12 = arith.constant 0 : index
      %18 = vector.load %arg10[%c0_11, %c0_12] : memref<8x8xf32, #tpu.memory_space<vmem>>, vector<8x8xf32>
      %cst_13 = arith.constant dense<0.000000e+00> : vector<8x8xf32>
      %19 = tpu.matmul %12, %12, %cst_13 {dimension_numbers = #tpu.dot_dimension_numbers<[1], [1], [0], [0], [0, 0, 1, 0], [], []>} : vector<8x256xf32>, vector<8x256xf32>, vector<8x8xf32> -> vector<8x8xf32>
      %20 = arith.addf %18, %19 : vector<8x8xf32>
      %c0_14 = arith.constant 0 : index
      %c0_15 = arith.constant 0 : index
      %21 = vector.load %arg10[%c0_14, %c0_15] : memref<8x8xf32, #tpu.memory_space<vmem>>, vector<8x8xf32>
      tpu.vector_store %arg10[%c0_14, %c0_15], %20 {strides = array<i32>} : memref<8x8xf32, #tpu.memory_space<vmem>>, vector<8x8xf32>,
      %c1_i32_16 = arith.constant 1 : i32
      %22 = arith.cmpi eq, %arg1, %c1_i32_16 : i32
      %c0_i32_17 = arith.constant 0 : i32
      %23 = arith.cmpi eq, %arg2, %c0_i32_17 : i32
      %24 = arith.andi %22, %23 : i1
      %25 = arith.extui %24 : i1 to i32
      %c0_i32_18 = arith.constant 0 : i32
      %26 = arith.cmpi ne, %25, %c0_i32_18 : i32
      scf.if %26 {
        %c0_19 = arith.constant 0 : index
        %c0_20 = arith.constant 0 : index
        %27 = vector.load %arg4[%c0_19, %c0_20] : memref<40x8xf32, #tpu.memory_space<vmem>>, vector<40x8xf32>
        %c0_21 = arith.constant 0 : index
        %c0_22 = arith.constant 0 : index
        %28 = vector.load %arg9[%c0_21, %c0_22] : memref<8x1xf32, #tpu.memory_space<vmem>>, vector<8x1xf32>
        %cst_23 = arith.constant 0.001953125 : f32
        %29 = vector.broadcast %cst_23 : f32 to vector<8x1xf32>
        %30 = arith.mulf %28, %29 : vector<8x1xf32>
        %cst_24 = arith.constant dense<0.000000e+00> : vector<40x1xf32>
        %31 = tpu.matmul %27, %30, %cst_24 {dimension_numbers = #tpu.dot_dimension_numbers<[1], [0], [0], [1], [0, 0, 1, 1], [], []>} : vector<40x8xf32>, vector<8x1xf32>, vector<40x1xf32> -> vector<40x1xf32>
        %c0_25 = arith.constant 0 : index
        %c0_26 = arith.constant 0 : index
        %32 = vector.load %arg10[%c0_25, %c0_26] : memref<8x8xf32, #tpu.memory_space<vmem>>, vector<8x8xf32>
        %cst_27 = arith.constant dense<0.000000e+00> : vector<40x8xf32>
        %33 = tpu.matmul %27, %32, %cst_27 {dimension_numbers = #tpu.dot_dimension_numbers<[1], [0], [0], [1], [0, 0, 1, 1], [], []>} : vector<40x8xf32>, vector<8x8xf32>, vector<40x8xf32> -> vector<40x8xf32>
        %34 = arith.mulf %33, %27 : vector<40x8xf32>
        %cst_28 = arith.constant dense<0.000000e+00> : vector<40xf32>
        %35 = vector.multi_reduction <add>, %34, %cst_28 [1] : vector<40x8xf32> to vector<40xf32>
        %36 = vector.shape_cast %35 : vector<40xf32> to vector<40x1xf32>
        %cst_29 = arith.constant 0.001953125 : f32
        %37 = vector.broadcast %cst_29 : f32 to vector<40x1xf32>
        %38 = arith.mulf %36, %37 : vector<40x1xf32>
        %39 = arith.mulf %31, %31 : vector<40x1xf32>
        %40 = arith.subf %38, %39 : vector<40x1xf32>
        %cst_30 = arith.constant 0.000000e+00 : f32
        %41 = vector.broadcast %cst_30 : f32 to vector<40x1xf32>
        %42 = arith.maximumf %40, %41 : vector<40x1xf32>
        %c0_31 = arith.constant 0 : index
        %c0_32 = arith.constant 0 : index
        %43 = vector.load %arg5[%c0_31, %c0_32] : memref<40x1xf32, #tpu.memory_space<vmem>>, vector<40x1xf32>
        %cst_33 = arith.constant 9.99999974E-6 : f32
        %44 = vector.broadcast %cst_33 : f32 to vector<40x1xf32>
        %45 = arith.addf %42, %44 : vector<40x1xf32>
        %46 = math.rsqrt %45 : vector<40x1xf32>
        %47 = arith.mulf %43, %46 : vector<40x1xf32>
        %c0_34 = arith.constant 0 : index
        %c0_35 = arith.constant 0 : index
        %48 = vector.load %arg11[%c0_34, %c0_35] : memref<40x1xf32, #tpu.memory_space<vmem>>, vector<40x1xf32>
        tpu.vector_store %arg11[%c0_34, %c0_35], %47 {strides = array<i32>} : memref<40x1xf32, #tpu.memory_space<vmem>>, vector<40x1xf32>,
        %c0_36 = arith.constant 0 : index
        %c0_37 = arith.constant 0 : index
        %49 = vector.load %arg6[%c0_36, %c0_37] : memref<40x1xf32, #tpu.memory_space<vmem>>, vector<40x1xf32>
        %50 = arith.mulf %31, %47 : vector<40x1xf32>
        %51 = arith.subf %49, %50 : vector<40x1xf32>
        %c0_38 = arith.constant 0 : index
        %c0_39 = arith.constant 0 : index
        %52 = vector.load %arg12[%c0_38, %c0_39] : memref<40x1xf32, #tpu.memory_space<vmem>>, vector<40x1xf32>
        tpu.vector_store %arg12[%c0_38, %c0_39], %51 {strides = array<i32>} : memref<40x1xf32, #tpu.memory_space<vmem>>, vector<40x1xf32>,
      } else {
      }
    } else {
    }
    %c1_i32 = arith.constant 1 : i32
    %3 = arith.cmpi eq, %arg0, %c1_i32 : i32
    %4 = arith.extui %3 : i1 to i32
    %c0_i32_1 = arith.constant 0 : i32
    %5 = arith.cmpi ne, %4, %c0_i32_1 : i32
    scf.if %5 {
      %c0 = arith.constant 0 : index
      %c0_2 = arith.constant 0 : index
      %6 = vector.load %arg4[%c0, %c0_2] : memref<40x8xf32, #tpu.memory_space<vmem>>, vector<40x8xf32>
      %c0_3 = arith.constant 0 : index
      %c0_4 = arith.constant 0 : index
      %c0_5 = arith.constant 0 : index
      %7 = vector.load %arg3[%c0_3, %c0_4, %c0_5] : memref<1x8x256xf32, #tpu.memory_space<vmem>>, vector<1x8x256xf32>
      %8 = vector.shape_cast %7 : vector<1x8x256xf32> to vector<8x256xf32>
      %cst = arith.constant dense<0.000000e+00> : vector<40x256xf32>
      %9 = tpu.matmul %6, %8, %cst {dimension_numbers = #tpu.dot_dimension_numbers<[1], [0], [0], [1], [0, 0, 1, 1], [], []>} : vector<40x8xf32>, vector<8x256xf32>, vector<40x256xf32> -> vector<40x256xf32>
      %c0_6 = arith.constant 0 : index
      %c0_7 = arith.constant 0 : index
      %10 = vector.load %arg11[%c0_6, %c0_7] : memref<40x1xf32, #tpu.memory_space<vmem>>, vector<40x1xf32>
      %11 = vector.broadcast %10 : vector<40x1xf32> to vector<40x256xf32>
      %12 = arith.mulf %9, %11 : vector<40x256xf32>
      %c0_8 = arith.constant 0 : index
      %c0_9 = arith.constant 0 : index
      %13 = vector.load %arg12[%c0_8, %c0_9] : memref<40x1xf32, #tpu.memory_space<vmem>>, vector<40x1xf32>
      %14 = vector.broadcast %13 : vector<40x1xf32> to vector<40x256xf32>
      %15 = arith.addf %12, %14 : vector<40x256xf32>
      %16 = math.tanh %15 : vector<40x256xf32>
      %17 = vector.extract_strided_slice %16 {offsets = [0, 0], sizes = [8, 256], strides = [1, 1]} : vector<40x256xf32> to vector<8x256xf32>
      %c0_10 = arith.constant 0 : index
      %c0_11 = arith.constant 0 : index
      %c0_12 = arith.constant 0 : index
      %18 = vector.load %arg7[%c0_10, %c0_11, %c0_12] : memref<1x8x256xf32, #tpu.memory_space<vmem>>, vector<1x8x256xf32>
      %19 = vector.shape_cast %18 : vector<1x8x256xf32> to vector<8x256xf32>
      %20 = vector.shape_cast %17 : vector<8x256xf32> to vector<1x8x256xf32>
      tpu.vector_store %arg7[%c0_10, %c0_11, %c0_12], %20 {strides = array<i32>} : memref<1x8x256xf32, #tpu.memory_space<vmem>>, vector<1x8x256xf32>,
      %21 = vector.extract_strided_slice %16 {offsets = [8, 0], sizes = [32, 256], strides = [1, 1]} : vector<40x256xf32> to vector<32x256xf32>
      %c0_13 = arith.constant 0 : index
      %c0_14 = arith.constant 0 : index
      %c0_15 = arith.constant 0 : index
      %22 = vector.load %arg8[%c0_13, %c0_14, %c0_15] : memref<1x32x256xf32, #tpu.memory_space<vmem>>, vector<1x32x256xf32>
      %23 = vector.shape_cast %22 : vector<1x32x256xf32> to vector<32x256xf32>
      %24 = vector.shape_cast %21 : vector<32x256xf32> to vector<1x32x256xf32>
      tpu.vector_store %arg8[%c0_13, %c0_14, %c0_15], %24 {strides = array<i32>} : memref<1x32x256xf32, #tpu.memory_space<vmem>>, vector<1x32x256xf32>,
    } else {
    }
    return
  }
  func.func @transform_0(%arg0: i32, %arg1: i32, %arg2: i32) -> (i32, i32, i32) {
    %c0_i32 = arith.constant 0 : i32
    %c0_i32_0 = arith.constant 0 : i32
    return %arg1, %c0_i32, %arg2 : i32, i32, i32
  }
  func.func @transform_1(%arg0: i32, %arg1: i32, %arg2: i32) -> (i32, i32) {
    %c0_i32 = arith.constant 0 : i32
    %c0_i32_0 = arith.constant 0 : i32
    %c0_i32_1 = arith.constant 0 : i32
    return %c0_i32, %c0_i32_0 : i32, i32
  }
  func.func @transform_2(%arg0: i32, %arg1: i32, %arg2: i32) -> (i32, i32) {
    %c0_i32 = arith.constant 0 : i32
    %c0_i32_0 = arith.constant 0 : i32
    %c0_i32_1 = arith.constant 0 : i32
    return %c0_i32, %c0_i32_0 : i32, i32
  }
  func.func @transform_3(%arg0: i32, %arg1: i32, %arg2: i32) -> (i32, i32) {
    %c0_i32 = arith.constant 0 : i32
    %c0_i32_0 = arith.constant 0 : i32
    %c0_i32_1 = arith.constant 0 : i32
    return %c0_i32, %c0_i32_0 : i32, i32
  }
  func.func @transform_4(%arg0: i32, %arg1: i32, %arg2: i32) -> (i32, i32, i32) {
    %0 = arith.muli %arg1, %arg0 : i32
    %1 = arith.muli %arg2, %arg0 : i32
    %c0_i32 = arith.constant 0 : i32
    %c0_i32_0 = arith.constant 0 : i32
    return %0, %c0_i32, %1 : i32, i32, i32
  }
  func.func @transform_5(%arg0: i32, %arg1: i32, %arg2: i32) -> (i32, i32, i32) {
    %0 = arith.muli %arg1, %arg0 : i32
    %1 = arith.muli %arg2, %arg0 : i32
    %c0_i32 = arith.constant 0 : i32
    %c0_i32_0 = arith.constant 0 : i32
    return %0, %c0_i32, %1 : i32, i32, i32
  }
}

</mosaic_0001>

<bundles_post_ra>
// kernel: _lambda_.1
= control target key start
LH: loop header
LB: loop body
LE: loop exit
PB: predicated region body
PF: predicated region fallthrough
CT: control target
= control target key end

     0   :  { %s1319_s18 = smov 0   ;;  %s1321_s19 = smov 0   ;;  %s1532_s0 = inlined_call_operand.vmem [shape: f32[2,8,256], index: 0, kind: input, shape index: {}]   ;;  %s1533_s1 = inlined_call_operand.vmem [shape: f32[40,8], index: 1, kind: input, shape index: {}]   ;;  %s1534_s2 = inlined_call_operand.vmem [shape: f32[40,1], index: 2, kind: input, shape index: {}]   ;;  %s1535_s3 = inlined_call_operand.vmem [shape: f32[40,1], index: 3, kind: input, shape index: {}]   ;;  %s1536_s4 = inlined_call_operand.vmem [shape: f32[2,8,256], index: 4, kind: output, shape index: {0}]   ;;  %s1537_s5 = inlined_call_operand.vmem [shape: f32[2,32,256], index: 5, kind: output, shape index: {1}]  }
   0x1   :  { %s1323_s20 = smov 0   ;;  %s1325_s21 = smov 0  }
   0x2   :  { %s1327_s22 = smov 0  }
   0x3 LB: > { %s31_s23 = sadd.s32 1, %s1274_s20  ;;  %s35_s24 = sadd.s32 1, %s1278_s21  ;;  %s1282_s22 = sphi %s1327_s22, %s16_s22   ;;  %s1278_s21 = sphi %s1325_s21, %s1541_s21   ;;  %s1274_s20 = sphi %s1323_s20, %s1540_s20   ;;  %s1270_s19 = sphi %s1321_s19, %s1539_s19   ;;  %s1266_s18 = sphi %s1319_s18, %s1538_s18  }
   0x4   : > { %p33_p0 = scmp.ge.s32.totalorder %s31_s23, 2  ;;  %p1086_p1 = scmp.ge.s32.totalorder %s1282_s22, 1 }
   0x5   : > { %p228_p2 = scmp.lt.s32.totalorder %s1282_s22, 5 }
   0x6   : > { %s1543_s23 = smov (%p33_p0, %s31_s23), 0  ;;  %s1545_s24 = smov (!%p33_p0, %s35_s24), %s1278_s21 }
   0x7   : > { %p229_p3 = pnand %p1086_p1, %p228_p2  ;;  %p37_p4 = scmp.ge.s32.totalorder %s1545_s24, 2 }
   0x8   : > { %p278_p5 = scmp.lt.s32.totalorder (!%p229_p3), %s1266_s18, 1  ;;  %s287_s25 = smul.u32 (!%p229_p3), %s1266_s18, %s1270_s19 }
   0x9   : > { %s1547_s24 = smov (%p37_p4, %s1545_s24), 0  ;;  %232 = sbr.rel (%p229_p3) target bundleno = 847 (0x34f), region = 36 }
   0xa   : > { %p290_p6 = scmp.lt.s32.totalorder (!%p229_p3), %s287_s25, 1  ;;  %p1093_p7 = scmp.ne.s32.totalorder (!%p229_p3), %s1270_s19, 0 }
   0xe   : > { %s279_s26 = scalar_select %p278_p5, %s1266_s18, 1 }
   0xf   : > { %s1549_s25 = smov (!%p290_p6, %s287_s25), 1  ;;  %318 = sbr.rel (%p1093_p7) target bundleno = 614 (0x266), region = 40 }
  0x10   : > { %s1114_s27 = sshll.u32 %s279_s26, 4  ;;  %s1115_s6 = sshll.u32 %s1549_s25, 4 }
  0x11   : > { %s1360_s30 = scalar_lea.vmem %s1532_s0, %s1114_s27  ;;  %s1116_s7 = sshll.u32 %s1549_s25, 6 }
  0x12   : > { %s1365_s10 = scalar_lea.vmem %s1536_s4, %s1115_s6  ;;  %s1370_s13 = scalar_lea.vmem %s1537_s5, %s1116_s7 }
  0x13   : > { %p319_p8 = scmp.eq.s32.totalorder (!%p1093_p7), %s1266_s18, 0 }
  0x14   : > { %vm325_vm0 = vcmask (%p319_p8), 7168   ;;  %vm327_vm1 = vcmask (%p319_p8), 64512   ;;  %v1284_v0 = vmov (%p319_p8), 0.0  }
  0x15   : > { %324 = sbr.rel (!%p319_p8) target bundleno = 26 (0x1a), region = 44  ;;  %326 = vst.msk [vmem:[#allocation2] sm:$0xff] (%p319_p8), %vm325_vm0, %v1284_v0 }
  0x16   : > { %328 = vst.msk [vmem:[#allocation3] sm:$0xff] (%p319_p8), %vm327_vm1, %v1284_v0 }
  0x1a PF: > { %v330_v1 = vld [vmem:[%s1360_s30 + $0x8] sm:$0xff]  ;;  %v329_v2 = vld [vmem:[%s1360_s30] sm:$0xff]  ;;  %p412_p9 = scmp.eq.s32.totalorder %s1266_s18, 1  ;;  %vm336_vm2 = vcmask 7168   ;;  %vm410_vm3 = vcmask 64512  }
  0x1b   : > { %369 = vmatprep.subr.mxu0 %v330_v1  ;;  %403 = vmatprep.mubr.f32.mxu0 %v330_v1  ;;  %v332_v3 = vadd.f32 %v330_v1, %v329_v2  ;;  %v417_v12 = vld [vmem:[%s1533_s1] sm:$0xff] (%p412_p9)  ;;  %v1285_v13 = vmov (%p412_p9), 0.0   ;;  %vm1286_vm4 = vmmov (%p412_p9), 0   ;;  %v418_v16 = vld [vmem:[%s1533_s1 + $0x8] sm:$0xff] (%p412_p9)  ;;  %v419_v17 = vld [vmem:[%s1533_s1 + $0x10] sm:$0xff] (%p412_p9) }
  0x1c   : > { %370 = vmatpush1.xpose.msra.mxu0 %v329_v2  ;;  %v331_v4 = vld [vmem:[#allocation2] sm:$0xff]  ;;  %1148 = vmatprep.subr.mxu1 (%p412_p9), %v1285_v13  ;;  %v420_v18 = vld [vmem:[%s1533_s1 + $0x18] sm:$0xff] (%p412_p9) }
  0x1d   : > { %333 = vadd.xlane.f32.xlu0 %v332_v3  ;;  %v338_v7 = vld [vmem:[#allocation3] sm:$0xff]  ;;  %1150 = vmatprep.mubr.msk.f32.mxu1 (%p412_p9), %vm1286_vm4, %v1285_v13  ;;  %v421_v19 = vld [vmem:[%s1533_s1 + $0x20] sm:$0xff] (%p412_p9) }
  0x1e   : > { %1131 = vmatprep.subr.mxu0 (%p412_p9), %v1285_v13 }
  0x1f   : > { %404 = vmatmul.mubr.f32.vlgmr.msra.gmra.mxu0 %v329_v2 }
  0x20   : > { %1133 = vmatprep.mubr.msk.f32.mxu0 (%p412_p9), %vm1286_vm4, %v1285_v13 }
  0xa6   : > { %v334_v5 = vpop.xlane.xlu0 %333 }
  0xa7   : > { %v335_v6 = vadd.f32 %v334_v5, %v331_v4 }
  0xa9   : > { %337 = vst.msk [vmem:[#allocation2] sm:$0xff] %vm336_vm2, %v335_v6 }
  0xb0   : > { %v422_v14 = vld [vmem:[#allocation2] sm:$0xff] (%p412_p9) }
  0xb1   : > { %v423_v15 = vmul.f32 (%p412_p9), 0.001953125, %v422_v14  ;;  %v660_v14 = vld [vmem:[%s1534_s2] sm:$0xff] (%p412_p9) }
  0xb3   : > { %1132 = vmatpush3.msra.mxu0 (%p412_p9), %v423_v15 }
  0xb4   : > { %1134 = vmatmul.mubr.msk.f32.vlgmr.msra.gmra.mxu0 (%p412_p9), %vm410_vm3, %v417_v12 }
  0xb5   : > { %1136 = vmatprep.mubr.msk.f32.mxu0 (%p412_p9), %vm1286_vm4, %v1285_v13 }
  0xb8   : > { %1137 = vmatmul.mubr.msk.f32.gmra.mxu0 (%p412_p9), %vm410_vm3, %v418_v16 }
  0xb9   : > { %1139 = vmatprep.mubr.msk.f32.mxu0 (%p412_p9), %vm1286_vm4, %v1285_v13 }
  0xbc   : > { %1140 = vmatmul.mubr.msk.f32.gmra.mxu0 (%p412_p9), %vm410_vm3, %v419_v17 }
  0xbd   : > { %1142 = vmatprep.mubr.msk.f32.mxu0 (%p412_p9), %vm1286_vm4, %v1285_v13 }
  0xc0   : > { %1143 = vmatmul.mubr.msk.f32.gmra.mxu0 (%p412_p9), %vm410_vm3, %v420_v18 }
  0xc1   : > { %1145 = vmatprep.mubr.msk.f32.mxu0 (%p412_p9), %vm1286_vm4, %v1285_v13 }
  0xc4   : > { %1146 = vmatmul.mubr.msk.f32.gmra.mxu0 (%p412_p9), %vm410_vm3, %v421_v19 }
  0xde   : > { %416 = sbr.rel (!%p412_p9) target bundleno = 614 (0x266), region = 48 }
  0xdf   : > { %v405_v8 = vpop.f32.mrf.mxu0 }
  0xe0   : > { %v409_v9 = vadd.f32 %v405_v8, %v338_v7 }
  0xe1   : > { %v407_v10 = vpop.f32.mrf.mxu0 }
  0xe2   : > { %411 = vst.msk [vmem:[#allocation3] sm:$0xff] %vm410_vm3, %v409_v9 }
  0xe9   : > { %v529_v11 = vld [vmem:[#allocation3] sm:$0xff] }
  0xea   : > { %1149 = vmatpush3.msra.mxu1 %v529_v11 }
  0xeb   : > { %1151 = vmatmul.mubr.msk.f32.vlgmr.msra.gmra.mxu1 %vm410_vm3, %v417_v12 }
  0xec   : > { %1153 = vmatprep.mubr.msk.f32.mxu1 %vm1286_vm4, %v1285_v13 }
  0xef   : > { %1154 = vmatmul.mubr.msk.f32.gmra.mxu1 %vm410_vm3, %v418_v16 }
  0xf0   : > { %1156 = vmatprep.mubr.msk.f32.mxu1 %vm1286_vm4, %v1285_v13 }
  0xf3   : > { %1157 = vmatmul.mubr.msk.f32.gmra.mxu1 %vm410_vm3, %v419_v17 }
  0xf4   : > { %1159 = vmatprep.mubr.msk.f32.mxu1 %vm1286_vm4, %v1285_v13 }
  0xf7   : > { %1160 = vmatmul.mubr.msk.f32.gmra.mxu1 %vm410_vm3, %v420_v18 }
  0xf8   : > { %1162 = vmatprep.mubr.msk.f32.mxu1 %vm1286_vm4, %v1285_v13 }
  0xfb   : > { %1163 = vmatmul.mubr.msk.f32.gmra.mxu1 %vm410_vm3, %v421_v19 }
 0x174   : > { %v1415_v24 = vpop.f32.mrf.mxu0 }
 0x175   : > { %v645_v50 = vmul.f32 %v1415_v24, %v1415_v24 }
 0x176   : > { %v1135_v27 = vpop.f32.mrf.mxu0 }
 0x177   : > { %v662_v27 = vld [vmem:[%s1534_s2 + $0x10] sm:$0xff] }
 0x178   : > { %v1420_v38 = vpop.f32.mrf.mxu0 }
 0x179   : > { %v646_v54 = vmul.f32 %v1420_v38, %v1420_v38 }
 0x17a   : > { %v1138_v41 = vpop.f32.mrf.mxu0 }
 0x17c   : > { %v1423_v44 = vpop.f32.mrf.mxu0 }
 0x17d   : > { %v647_v60 = vmul.f32 %v1423_v44, %v1423_v44 }
 0x17e   : > { %v1141_v45 = vpop.f32.mrf.mxu0 }
 0x180   : > { %v1425_v46 = vpop.f32.mrf.mxu0 }
 0x181   : > { %v648_v2 = vmul.f32 %v1425_v46, %v1425_v46 }
 0x182   : > { %v1144_v47 = vpop.f32.mrf.mxu0 }
 0x184   : > { %v1427_v48 = vpop.f32.mrf.mxu0 }
 0x185   : > { %v649_v8 = vmul.f32 %v1427_v48, %v1427_v48 }
 0x186   : > { %v1147_v49 = vpop.f32.mrf.mxu0 }
 0x1ab   : > { %v596_v20 = vpop.f32.mrf.mxu1 }
 0x1ac   : > { %v620_v21 = vmul.f32 %v596_v20, %v417_v12  ;;  %v661_v20 = vld [vmem:[%s1534_s2 + $0x8] sm:$0xff] }
 0x1ad   : > { %v1152_v22 = vpop.f32.mrf.mxu1 }
 0x1ae   : > { %v625_v23 = vsel %vm410_vm3, %v620_v21, 0.0 }
 0x1af   : > { %626 = vadd.xlane.f32.xlu0 %v625_v23  ;;  %v601_v25 = vpop.f32.mrf.mxu1 }
 0x1b0   : > { %v621_v26 = vmul.f32 %v601_v25, %v418_v16 }
 0x1b1   : > { %v1155_v28 = vpop.f32.mrf.mxu1 }
 0x1b2   : > { %v628_v29 = vsel %vm410_vm3, %v621_v26, 0.0  ;;  %v686_v26 = vld [vmem:[%s1535_s3 + $0x8] sm:$0xff] }
 0x1b3   : > { %629 = vadd.xlane.f32.xlu0 %v628_v29  ;;  %v606_v30 = vpop.f32.mrf.mxu1 }
 0x1b4   : > { %v622_v31 = vmul.f32 %v606_v30, %v419_v17 }
 0x1b5   : > { %v1158_v32 = vpop.f32.mrf.mxu1 }
 0x1b6   : > { %v631_v33 = vsel %vm410_vm3, %v622_v31, 0.0  ;;  %v687_v31 = vld [vmem:[%s1535_s3 + $0x10] sm:$0xff]  ;;  %v663_v32 = vld [vmem:[%s1534_s2 + $0x18] sm:$0xff] }
 0x1b7   : > { %632 = vadd.xlane.f32.xlu1 %v631_v33  ;;  %v611_v34 = vpop.f32.mrf.mxu1 }
 0x1b8   : > { %v623_v35 = vmul.f32 %v611_v34, %v420_v18 }
 0x1b9   : > { %v1161_v36 = vpop.f32.mrf.mxu1 }
 0x1ba   : > { %v634_v37 = vsel %vm410_vm3, %v623_v35, 0.0 }
 0x1bb   : > { %635 = vadd.xlane.f32.xlu1 %v634_v37  ;;  %v616_v39 = vpop.f32.mrf.mxu1  ;;  %v688_v37 = vld [vmem:[%s1535_s3 + $0x18] sm:$0xff] }
 0x1bc   : > { %v624_v40 = vmul.f32 %v616_v39, %v421_v19  ;;  %v685_v19 = vld [vmem:[%s1535_s3] sm:$0xff] }
 0x1bd   : > { %v1164_v42 = vpop.f32.mrf.mxu1 }
 0x1be   : > { %v637_v43 = vsel %vm410_vm3, %v624_v40, 0.0 }
 0x1bf   : > { %638 = vadd.xlane.f32.xlu0 %v637_v43  ;;  %v689_v43 = vld [vmem:[%s1535_s3 + $0x20] sm:$0xff] }
 0x238   : > { %v627_v51 = vpop.xlane.xlu0 %626 }
 0x239   : > { %v640_v52 = vmul.f32 0.001953125, %v627_v51 }
 0x23b   : > { %v650_v53 = vsub.f32 %v640_v52, %v645_v50 }
 0x23c   : > { %v630_v55 = vpop.xlane.xlu0 %629 }
 0x23d   : > { %v655_v56 = vmax.f32 %v650_v53, 0.0  ;;  %v641_v57 = vmul.f32 0.001953125, %v630_v55 }
 0x23f   : > { %v665_v58 = vadd.f32 1e-05, %v655_v56  ;;  %v651_v59 = vsub.f32 %v641_v57, %v646_v54 }
 0x240   : > { %v633_v61 = vpop.xlane.xlu1 %632 }
 0x241   : > { %1212 = vrsqrt.f32 %v665_v58  ;;  %v656_v62 = vmax.f32 %v651_v59, 0.0  ;;  %v642_v63 = vmul.f32 0.001953125, %v633_v61 }
 0x243   : > { %v666_v0 = vadd.f32 1e-05, %v656_v62  ;;  %v652_v1 = vsub.f32 %v642_v63, %v647_v60 }
 0x244   : > { %v636_v3 = vpop.xlane.xlu1 %635 }
 0x245   : > { %1214 = vrsqrt.f32 %v666_v0  ;;  %v657_v4 = vmax.f32 %v652_v1, 0.0  ;;  %v643_v5 = vmul.f32 0.001953125, %v636_v3 }
 0x247   : > { %v667_v6 = vadd.f32 1e-05, %v657_v4  ;;  %v653_v7 = vsub.f32 %v643_v5, %v648_v2 }
 0x248   : > { %v639_v9 = vpop.xlane.xlu0 %638 }
 0x249   : > { %1216 = vrsqrt.f32 %v667_v6  ;;  %v658_v10 = vmax.f32 %v653_v7, 0.0  ;;  %v644_v11 = vmul.f32 0.001953125, %v639_v9 }
 0x24b   : > { %v668_v12 = vadd.f32 1e-05, %v658_v10  ;;  %v654_v13 = vsub.f32 %v644_v11, %v649_v8 }
 0x24d   : > { %1218 = vrsqrt.f32 %v668_v12  ;;  %v659_v15 = vmax.f32 %v654_v13, 0.0 }
 0x24e   : > { %v1213_v16 = vpop.eup %1212 }
 0x24f   : > { %v675_v17 = vmul.f32 %v1213_v16, %v660_v14  ;;  %v669_v18 = vadd.f32 1e-05, %v659_v15 }
 0x251   : > { %680 = vst.msk [vmem:[#allocation4] sm:$0xff] %vm336_vm2, %v675_v17  ;;  %v690_v21 = vmul.f32 %v675_v17, %v1415_v24  ;;  %1220 = vrsqrt.f32 %v669_v18 }
 0x252   : > { %v1215_v22 = vpop.eup %1214 }
 0x253   : > { %v695_v23 = vsub.f32 %v685_v19, %v690_v21  ;;  %v676_v25 = vmul.f32 %v1215_v22, %v661_v20 }
 0x255   : > { %700 = vst.msk [vmem:[#allocation5] sm:$0xff] %vm336_vm2, %v695_v23  ;;  %681 = vst.msk [vmem:[#allocation4 + $0x8] sm:$0xff] %vm336_vm2, %v676_v25  ;;  %v691_v28 = vmul.f32 %v676_v25, %v1420_v38  ;;  %v664_v38 = vld [vmem:[%s1534_s2 + $0x20] sm:$0xff] }
 0x256   : > { %v1217_v29 = vpop.eup %1216 }
 0x257   : > { %v696_v24 = vsub.f32 %v686_v26, %v691_v28  ;;  %v677_v30 = vmul.f32 %v1217_v29, %v662_v27 }
 0x259   : > { %701 = vst.msk [vmem:[#allocation5 + $0x8] sm:$0xff] %vm336_vm2, %v696_v24  ;;  %682 = vst.msk [vmem:[#allocation4 + $0x10] sm:$0xff] %vm336_vm2, %v677_v30  ;;  %v692_v33 = vmul.f32 %v677_v30, %v1423_v44 }
 0x25a   : > { %v1219_v34 = vpop.eup %1218 }
 0x25b   : > { %v697_v35 = vsub.f32 %v687_v31, %v692_v33  ;;  %v678_v36 = vmul.f32 %v1219_v34, %v663_v32 }
 0x25d   : > { %702 = vst.msk [vmem:[#allocation5 + $0x10] sm:$0xff] %vm336_vm2, %v697_v35  ;;  %683 = vst.msk [vmem:[#allocation4 + $0x18] sm:$0xff] %vm336_vm2, %v678_v36  ;;  %v693_v39 = vmul.f32 %v678_v36, %v1425_v46 }
 0x25e   : > { %v1221_v40 = vpop.eup %1220 }
 0x25f   : > { %v698_v41 = vsub.f32 %v688_v37, %v693_v39  ;;  %v679_v42 = vmul.f32 %v1221_v40, %v664_v38 }
 0x261   : > { %703 = vst.msk [vmem:[#allocation5 + $0x18] sm:$0xff] %vm336_vm2, %v698_v41  ;;  %684 = vst.msk [vmem:[#allocation4 + $0x20] sm:$0xff] %vm336_vm2, %v679_v42  ;;  %v694_v44 = vmul.f32 %v679_v42, %v1427_v48 }
 0x263   : > { %v699_v45 = vsub.f32 %v689_v43, %v694_v44 }
 0x265   : > { %704 = vst.msk [vmem:[#allocation5 + $0x20] sm:$0xff] %vm336_vm2, %v699_v45 }
 0x266 PF: > { %p1106_p10 = scmp.ne.s32.totalorder %s1270_s19, 1 }
 0x268   : > { %708 = sbr.rel (%p1106_p10) target bundleno = 847 (0x34f), region = 52 }
 0x26d   : > { %v715_v46 = vld [vmem:[%s1360_s30 + $0x8] sm:$0xff]  ;;  %v714_v47 = vld [vmem:[%s1360_s30] sm:$0xff]  ;;  %vm716_vm5 = vcmask 64512   ;;  %v712_v48 = vld [vmem:[%s1533_s1 + $0x18] sm:$0xff]  ;;  %v1287_v50 = vmov 0.0   ;;  %v1288_v55 = vmov 0  }
 0x26e   : > { %762 = vmatprep.subr.mxu0 %v715_v46  ;;  %1165 = vmatprep.subr.mxu1 %v715_v46  ;;  %v709_v49 = vld [vmem:[%s1533_s1] sm:$0xff]  ;;  %v827_v52 = vld [vmem:[#allocation4] sm:$0xff]  ;;  %v710_v53 = vld [vmem:[%s1533_s1 + $0x8] sm:$0xff] }
 0x26f   : > { %763 = vmatpush1.msra.mxu0 %v714_v47  ;;  %1166 = vmatpush1.msra.mxu1 %v714_v47  ;;  %v829_v51 = vld [vmem:[#allocation4 + $0x10] sm:$0xff]  ;;  %v830_v56 = vld [vmem:[#allocation4 + $0x18] sm:$0xff]  ;;  %v828_v57 = vld [vmem:[#allocation4 + $0x8] sm:$0xff] }
 0x270   : > { %796 = vmatprep.mubr.f32.mxu0 %v1287_v50  ;;  %814 = vmatprep.mubr.f32.mxu1 %v1287_v50  ;;  %v713_v54 = vld [vmem:[%s1533_s1 + $0x20] sm:$0xff]  ;;  %v711_v58 = vld [vmem:[%s1533_s1 + $0x10] sm:$0xff]  ;;  %v867_v59 = vld [vmem:[#allocation5] sm:$0xff] }
 0x271   : > { %1107 = vmatmul.mubr.msk.f32.vlgmr.msra.gmra.mxu0 %vm716_vm5, %v709_v49  ;;  %1110 = vmatmul.mubr.msk.f32.vlgmr.msra.gmra.mxu1 %vm716_vm5, %v712_v48  ;;  %v831_v60 = vld [vmem:[#allocation4 + $0x20] sm:$0xff]  ;;  %v869_v61 = vld [vmem:[#allocation5 + $0x10] sm:$0xff]  ;;  %v868_v62 = vld [vmem:[#allocation5 + $0x8] sm:$0xff] }
 0x272   : > { %802 = vmatprep.mubr.f32.mxu0 %v1287_v50  ;;  %820 = vmatprep.mubr.f32.mxu1 %v1287_v50  ;;  %v871_v63 = vld [vmem:[#allocation5 + $0x20] sm:$0xff]  ;;  %v870_v0 = vld [vmem:[#allocation5 + $0x18] sm:$0xff] }
 0x273   : > { %1223 = vset.pattern.permute.xlu1 %v1288_v55  ;;  %1222 = vset.pattern.permute.xlu0 %v1288_v55 }
 0x274   : > { %844 = vperm.xlu1 %1223, %v829_v51   ;;  %834 = vperm.xlu0 %1222, %v827_v52  }
 0x275   : > { %1108 = vmatmul.mubr.msk.f32.gmra.mxu0 %vm716_vm5, %v710_v53  ;;  %1111 = vmatmul.mubr.msk.f32.gmra.mxu1 %vm716_vm5, %v713_v54 }
 0x276   : > { %808 = vmatprep.mubr.f32.mxu0 %v1287_v50 }
 0x278   : > { %849 = vperm.xlu1 %1223, %v830_v56   ;;  %839 = vperm.xlu0 %1222, %v828_v57  }
 0x279   : > { %1109 = vmatmul.mubr.msk.f32.gmra.mxu0 %vm716_vm5, %v711_v58 }
 0x27c   : > { %874 = vperm.xlu1 %1223, %v867_v59   ;;  %854 = vperm.xlu0 %1222, %v831_v60  }
 0x280   : > { %884 = vperm.xlu1 %1223, %v869_v61   ;;  %879 = vperm.xlu0 %1222, %v868_v62  }
 0x284   : > { %894 = vperm.xlu1 %1223, %v871_v63   ;;  %889 = vperm.xlu0 %1222, %v870_v0  }
 0x2ef   : > { %v835_v1 = vpop.permute.xlu0 %834  ;;  %v845_v2 = vpop.permute.xlu1 %844 }
 0x2f3   : > { %v840_v3 = vpop.permute.xlu0 %839  ;;  %v850_v4 = vpop.permute.xlu1 %849 }
 0x2f7   : > { %v855_v5 = vpop.permute.xlu0 %854  ;;  %v875_v6 = vpop.permute.xlu1 %874 }
 0x2fb   : > { %v880_v7 = vpop.permute.xlu0 %879  ;;  %v885_v10 = vpop.permute.xlu1 %884 }
 0x2ff   : > { %v890_v11 = vpop.permute.xlu0 %889  ;;  %v895_v29 = vpop.permute.xlu1 %894 }
 0x331   : > { %v798_v8 = vpop.f32.mrf.mxu0  ;;  %v816_v9 = vpop.f32.mrf.mxu1 }
 0x332   : > { %v857_v12 = vmul.f32 %v835_v1, %v798_v8  ;;  %v863_v13 = vmul.f32 %v850_v4, %v816_v9 }
 0x333   : > { %v800_v14 = vpop.f32.mrf.mxu0  ;;  %v818_v15 = vpop.f32.mrf.mxu1 }
 0x334   : > { %v897_v16 = vadd.f32 %v875_v6, %v857_v12  ;;  %v903_v17 = vadd.f32 %v890_v11, %v863_v13  ;;  %v858_v18 = vmul.f32 %v835_v1, %v800_v14  ;;  %v864_v19 = vmul.f32 %v850_v4, %v818_v15 }
 0x335   : > { %v804_v20 = vpop.f32.mrf.mxu0  ;;  %v822_v21 = vpop.f32.mrf.mxu1 }
 0x336   : > { %1224 = vtanh.f32 %v897_v16  ;;  %v898_v22 = vadd.f32 %v875_v6, %v858_v18  ;;  %v904_v23 = vadd.f32 %v890_v11, %v864_v19  ;;  %v859_v25 = vmul.f32 %v840_v3, %v804_v20 }
 0x337   : > { %1226 = vtanh.f32 %v903_v17  ;;  %v865_v26 = vmul.f32 %v855_v5, %v822_v21  ;;  %v806_v27 = vpop.f32.mrf.mxu0  ;;  %v824_v28 = vpop.f32.mrf.mxu1 }
 0x338   : > { %1228 = vtanh.f32 %v898_v22  ;;  %v899_v24 = vadd.f32 %v880_v7, %v859_v25  ;;  %v860_v30 = vmul.f32 %v840_v3, %v806_v27  ;;  %v866_v31 = vmul.f32 %v855_v5, %v824_v28 }
 0x339   : > { %1230 = vtanh.f32 %v904_v23  ;;  %v905_v32 = vadd.f32 %v895_v29, %v865_v26  ;;  %v810_v33 = vpop.f32.mrf.mxu0 }
 0x33a   : > { %1232 = vtanh.f32 %v899_v24  ;;  %v900_v34 = vadd.f32 %v880_v7, %v860_v30  ;;  %v906_v35 = vadd.f32 %v895_v29, %v866_v31  ;;  %v861_v36 = vmul.f32 %v845_v2, %v810_v33 }
 0x33b   : > { %1234 = vtanh.f32 %v905_v32  ;;  %v812_v37 = vpop.f32.mrf.mxu0 }
 0x33c   : > { %1236 = vtanh.f32 %v900_v34  ;;  %v901_v38 = vadd.f32 %v885_v10, %v861_v36  ;;  %v862_v39 = vmul.f32 %v845_v2, %v812_v37 }
 0x33d   : > { %1238 = vtanh.f32 %v906_v35 }
 0x33e   : > { %1240 = vtanh.f32 %v901_v38  ;;  %v902_v40 = vadd.f32 %v885_v10, %v862_v39 }
 0x340   : > { %1242 = vtanh.f32 %v902_v40 }
 0x343   : > { %v1225_v41 = vpop.eup %1224 }
 0x344   : > { %v1227_v42 = vpop.eup %1226  ;;  %917 = vst [vmem:[%s1365_s10] sm:$0xff] %v1225_v41 }
 0x345   : > { %v1229_v43 = vpop.eup %1228  ;;  %923 = vst [vmem:[%s1370_s13 + $0x20] sm:$0xff] %v1227_v42 }
 0x346   : > { %v1231_v44 = vpop.eup %1230  ;;  %918 = vst [vmem:[%s1365_s10 + $0x8] sm:$0xff] %v1229_v43 }
 0x347   : > { %v1233_v45 = vpop.eup %1232  ;;  %924 = vst [vmem:[%s1370_s13 + $0x28] sm:$0xff] %v1231_v44 }
 0x348   : > { %v1235_v46 = vpop.eup %1234  ;;  %919 = vst [vmem:[%s1370_s13] sm:$0xff] %v1233_v45 }
 0x349   : > { %v1237_v47 = vpop.eup %1236  ;;  %925 = vst [vmem:[%s1370_s13 + $0x30] sm:$0xff] %v1235_v46 }
 0x34a   : > { %v1239_v49 = vpop.eup %1238  ;;  %920 = vst [vmem:[%s1370_s13 + $0x8] sm:$0xff] %v1237_v47 }
 0x34b   : > { %v1241_v48 = vpop.eup %1240  ;;  %926 = vst [vmem:[%s1370_s13 + $0x38] sm:$0xff] %v1239_v49 }
 0x34c   : > { %921 = vst [vmem:[%s1370_s13 + $0x10] sm:$0xff] %v1241_v48 }
 0x34d   : > { %v1243_v50 = vpop.eup %1242 }
 0x34e   : > { %922 = vst [vmem:[%s1370_s13 + $0x18] sm:$0xff] %v1243_v50 }
 0x34f PF: > { %s16_s22 = sadd.s32 1, %s1282_s22   ;;  %s1538_s18 = smov %s1274_s20 }
 0x350   : > { %p13_p11 = scmp.ge.s32.totalorder %s16_s22, 6   ;;  %s1539_s19 = smov %s1278_s21 }
 0x351   : > { %s1540_s20 = smov %s1543_s23  ;;  %s1541_s21 = smov %s1547_s24 }
 0x352   :  { %15 = sbr.rel (!%p13_p11) target bundleno = 3 (0x3), region = 94 }

</bundles_post_ra>
